<compile_context>
chip_gen: v7x
topology: tpu7x:2x2x1
jax: 0.10.0
libtpu: 0.0.40
codegen_flags: <defaults>
</compile_context>

<pallas_src>
import jax
import jax.numpy as jnp
from jax.experimental import pallas as pl
from jax.experimental.pallas import tpu as pltpu

_EPS = 1e-5
_LANE = 128


# --------------------------------------------------------------------------- #
# VMEM budget / tile selection                                                 #
# --------------------------------------------------------------------------- #
def _vmem_budget_bytes():
    """Scoped-VMEM budget ~ half of physical VMEM (v7x 64 MiB -> 32 MiB, v5e/v6e -> 64 MiB)."""
    cap = 64 * 1024 * 1024
    try:
        cap = int(pltpu.get_tpu_info().vmem_capacity_bytes)
    except Exception:
        pass
    return max(24 * 1024 * 1024, min(cap // 2, 96 * 1024 * 1024))


def _stage_footprint_bytes(th, w, cp, in_bytes, out_bytes, mat_bytes, has_sep_residual):
    tile = th * w * cp
    fp = 2 * tile * in_bytes                    # double-buffered input tile
    fp += 2 * tile * out_bytes                  # double-buffered output tile
    if has_sep_residual:
        fp += 2 * tile * 4                      # double-buffered f32 residual tile
    fp += (th + 2) * w * cp * 4                 # f32 halo'd BN/ReLU scratch
    fp += 3 * tile * mat_bytes                  # K-packed matmul operand scratch
    fp += tile * 4                              # live f32 conv accumulator
    fp += 2 * 9 * cp * cp * mat_bytes           # packed conv weights (double-buffered)
    fp += 8 * w * cp * in_bytes                 # top/bot halo rows (double-buffered)
    fp += 2 * 1024 * 1024                       # params / masks / compiler temporaries
    return fp


def _pick_row_tile(h, w, cp, *, in_bytes, out_bytes, mat_bytes, has_sep_residual, budget):
    """Largest divisor of H whose per-step footprint fits the VMEM budget."""
    for th in range(h, 0, -1):
        if h % th == 0 and _stage_footprint_bytes(
                th, w, cp, in_bytes, out_bytes, mat_bytes, has_sep_residual) <= budget:
            return th
    return 1


# --------------------------------------------------------------------------- #
# Pass 1 (stage-1 input only): per-batch (sum, sumsq) over (H, W).             #
# --------------------------------------------------------------------------- #
def _bn_stats_kernel(x_ref, sum_ref, sq_ref):
    @pl.when(pl.program_id(1) == 0)
    def _init():
        sum_ref[...] = jnp.zeros_like(sum_ref)
        sq_ref[...] = jnp.zeros_like(sq_ref)

    v = x_ref[...].astype(jnp.float32).reshape(-1, x_ref.shape[-1])   # (TH*W, Cp)
    sum_ref[...] += jnp.sum(v, axis=0, keepdims=True)
    sq_ref[...] += jnp.sum(v * v, axis=0, keepdims=True)


def _bn_batch_stats(a, th, *, vmem_limit):
    """Per-batch partial stats -> two (N, 1, Cp) arrays; caller reduces over N."""
    n, h, w, cp = a.shape
    ht = h // th
    nbytes = n * h * w * cp * a.dtype.itemsize
    return pl.pallas_call(
        _bn_stats_kernel,
        out_shape=(jax.ShapeDtypeStruct((n, 1, cp), jnp.float32),
                   jax.ShapeDtypeStruct((n, 1, cp), jnp.float32)),
        grid_spec=pltpu.PrefetchScalarGridSpec(
            num_scalar_prefetch=0,
            grid=(n, ht),
            in_specs=[pl.BlockSpec((None, th, w, cp), lambda b, i: (b, i, 0, 0))],
            out_specs=(pl.BlockSpec((None, 1, cp), lambda b, i: (b, 0, 0)),
                       pl.BlockSpec((None, 1, cp), lambda b, i: (b, 0, 0))),
        ),
        compiler_params=pltpu.CompilerParams(
            dimension_semantics=("parallel", "arbitrary"),
            vmem_limit_bytes=vmem_limit),
        cost_estimate=pl.CostEstimate(flops=3 * n * h * w * cp, transcendentals=0,
                                      bytes_accessed=int(nbytes + 2 * n * cp * 4)),
    )(a)


# --------------------------------------------------------------------------- #
# Pass 2: fused affine-BN -> ReLU -> 3x3 conv (+ bias, + residual, + stats).   #
# --------------------------------------------------------------------------- #
def _make_stage_kernel(th, w, cp, *, has_halo, residual_mode, emit_stats, mat_dtype):
    n_rows = th * w

    def kernel(*refs):
        it = iter(refs)
        x_ref = next(it)
        top_ref = next(it) if has_halo else None
        bot_ref = next(it) if has_halo else None
        scale_ref = next(it)
        shift_ref = next(it)
        w_ref = next(it)
        b_ref = next(it)
        res_ref = next(it) if residual_mode == "separate" else None
        out_ref = next(it)
        sum_ref = next(it) if emit_stats else None
        sq_ref = next(it) if emit_stats else None
        hbuf_ref = next(it)                       # (TH+2, W, Cp) f32 halo'd ReLU(BN(x))
        kbuf_ref = next(it)                       # (TH*W, 3*Cp) K-packed MXU operand

        i = pl.program_id(1)
        scale = scale_ref[...]                    # (1, Cp): gamma / sqrt(var + eps)
        shift = shift_ref[...]                    # (1, Cp): beta - mean * scale

        def bn_relu(v):                           # (..., Cp) -> f32
            return jnp.maximum(v.astype(jnp.float32) * scale + shift, 0.0)

        # --- BN + ReLU of this row tile (and its 1-row conv halos) into f32 scratch ---
        hbuf_ref[pl.ds(1, th)] = bn_relu(x_ref[...])
        if has_halo:
            last = pl.num_programs(1) - 1

            @pl.when(i > 0)
            def _():
                hbuf_ref[0] = bn_relu(top_ref[...])

            @pl.when(i == 0)
            def _():
                hbuf_ref[0] = jnp.zeros((w, cp), jnp.float32)

            @pl.when(i < last)
            def _():
                hbuf_ref[th + 1] = bn_relu(bot_ref[...])

            @pl.when(i == last)
            def _():
                hbuf_ref[th + 1] = jnp.zeros((w, cp), jnp.float32)
        else:
            hbuf_ref[0] = jnp.zeros((w, cp), jnp.float32)
            hbuf_ref[th + 1] = jnp.zeros((w, cp), jnp.float32)

        # Column masks: zero taps whose 3x3 window hangs off the left/right image edge.
        # (rolls wrap within the flattened (TH*W) slab; the wrapped rows are exactly the
        #  masked ones, so no padded-width buffer is needed.)
        col = jax.lax.broadcasted_iota(jnp.int32, (n_rows, 1), 0) % w
        has_left = (col != 0).astype(jnp.float32)
        has_right = (col != w - 1).astype(jnp.float32)

        # --- 3x3 conv as 3 K-packed MXU matmuls (K = 3*Cp), f32 accumulation in a value ---
        acc = None
        for ky in range(3):
            slab = hbuf_ref[pl.ds(ky, th)].reshape(n_rows, cp)                  # f32
            left = pltpu.roll(slab, shift=1, axis=0) * has_left                 # input col x-1
            right = pltpu.roll(slab, shift=n_rows - 1, axis=0) * has_right      # input col x+1
            kbuf_ref[:, 0 * cp:1 * cp] = left.astype(mat_dtype)
            kbuf_ref[:, 1 * cp:2 * cp] = slab.astype(mat_dtype)
            kbuf_ref[:, 2 * cp:3 * cp] = right.astype(mat_dtype)
            p = jnp.dot(kbuf_ref[...], w_ref[ky], preferred_element_type=jnp.float32)
            acc = p if acc is None else acc + p

        v = acc + b_ref[...]                                                    # (TH*W, Cp) f32

        if emit_stats:
            # Batch statistics of this stage's own (pre-residual) output, accumulated per batch.
            @pl.when(i == 0)
            def _():
                sum_ref[...] = jnp.zeros_like(sum_ref)
                sq_ref[...] = jnp.zeros_like(sq_ref)

            sum_ref[...] += jnp.sum(v, axis=0, keepdims=True)
            sq_ref[...] += jnp.sum(v * v, axis=0, keepdims=True)

        out = v.reshape(th, w, cp)
        if residual_mode == "separate":
            out = out + res_ref[...].astype(jnp.float32)
        elif residual_mode == "from_input":
            out = out + x_ref[...].astype(jnp.float32)
        out_ref[...] = out.astype(out_ref.dtype)

    return kernel


def _stage(a, x_res, scale, shift, w_pack, bias, *, residual_mode, emit_stats, th,
           mat_dtype, out_dtype, vmem_limit):
    n, h, w, cp = a.shape
    ht = h // th
    has_halo = ht > 1
    kernel = _make_stage_kernel(th, w, cp, has_halo=has_halo,
                                residual_mode=residual_mode, emit_stats=emit_stats,
                                mat_dtype=mat_dtype)

    tile_spec = pl.BlockSpec((None, th, w, cp), lambda b, i: (b, i, 0, 0))
    vec_spec = pl.BlockSpec((1, cp), lambda b, i: (0, 0))                 # VMEM-resident params
    w_spec = pl.BlockSpec((3, 3 * cp, cp), lambda b, i: (0, 0, 0))        # VMEM-resident weights

    in_specs = [tile_spec]
    args = [a]
    if has_halo:
        in_specs += [
            pl.BlockSpec((None, None, w, cp),
                         lambda b, i: (b, jnp.maximum(i * th - 1, 0), 0, 0)),
            pl.BlockSpec((None, None, w, cp),
                         lambda b, i: (b, jnp.minimum((i + 1) * th, h - 1), 0, 0)),
        ]
        args += [a, a]
    in_specs += [vec_spec, vec_spec, w_spec, vec_spec]
    args += [scale, shift, w_pack, bias]
    if residual_mode == "separate":
        in_specs.append(tile_spec)
        args.append(x_res)

    out_shapes = [jax.ShapeDtypeStruct((n, h, w, cp), out_dtype)]
    out_specs = [pl.BlockSpec((None, th, w, cp), lambda b, i: (b, i, 0, 0))]
    if emit_stats:
        stat_spec = pl.BlockSpec((None, 1, cp), lambda b, i: (b, 0, 0))
        out_shapes += [jax.ShapeDtypeStruct((n, 1, cp), jnp.float32)] * 2
        out_specs += [stat_spec, stat_spec]

    in_bytes = a.dtype.itemsize
    out_bytes = jnp.dtype(out_dtype).itemsize
    mat_bytes = jnp.dtype(mat_dtype).itemsize
    bytes_accessed = n * h * w * cp * (in_bytes + out_bytes)
    if residual_mode == "separate":
        bytes_accessed += n * h * w * cp * 4
    if has_halo:
        bytes_accessed += 2 * n * ht * w * cp * in_bytes
    bytes_accessed += 9 * cp * cp * mat_bytes + 2 * n * cp * 4

    semantics = ("parallel", "arbitrary") if emit_stats else ("parallel", "parallel")

    return pl.pallas_call(
        kernel,
        out_shape=tuple(out_shapes),
        grid_spec=pltpu.PrefetchScalarGridSpec(
            num_scalar_prefetch=0,
            grid=(n, ht),
            in_specs=in_specs,
            out_specs=tuple(out_specs),
            scratch_shapes=[pltpu.VMEM((th + 2, w, cp), jnp.float32),   # halo'd ReLU(BN(x))
                            pltpu.VMEM((th * w, 3 * cp), mat_dtype)],   # K-packed conv operand
        ),
        compiler_params=pltpu.CompilerParams(
            dimension_semantics=semantics, vmem_limit_bytes=vmem_limit),
        cost_estimate=pl.CostEstimate(flops=2 * n * h * w * 9 * cp * cp, transcendentals=0,
                                      bytes_accessed=int(bytes_accessed)),
    )(*args)


# --------------------------------------------------------------------------- #
# Public wrapper                                                               #
# --------------------------------------------------------------------------- #
def simple_preact_block(x_nchw, gammas, betas, weights, biases, *,
                        matmul_dtype=jnp.bfloat16):
    """Forward of SimplePreActBlock (train-mode BN statistics, eps=1e-5, ReLU).

    x_nchw:  (N, C, H, W) float32
    gammas:  (S, C)  BN weight per stage
    betas:   (S, C)  BN bias per stage
    weights: (S, C, C, 3, 3) conv weight per stage (torch OIHW layout)
    biases:  (S, C)  conv bias per stage
    S = 1 for double=False, S = 2 for double=True.
    matmul_dtype: dtype of MXU operands and of the inter-stage activation (bf16 default;
                  accumulation and BN math are always f32; stage-2 BN stats are computed
                  from f32 pre-cast values inside the stage-1 kernel).
    """
    n, c, h, w = x_nchw.shape
    s_stages = gammas.shape[0]
    # TODO(synk): channel-pad-to-128 is only economical for C >= ~128; for tiny C (like the
    # C=4 demo) it inflates HBM traffic and MACs by 128/C — pack W*C into lanes if small-C
    # throughput ever matters.
    cp = -(-c // _LANE) * _LANE
    mat_bytes = jnp.dtype(matmul_dtype).itemsize
    budget = _vmem_budget_bytes()

    x = jnp.transpose(x_nchw, (0, 2, 3, 1)).astype(jnp.float32)
    x = jnp.pad(x, ((0, 0), (0, 0), (0, 0), (0, cp - c)))

    # Conv weights (S, Cout, Cin, 3, 3) -> K-packed (S, 3, 3*Cp, Cp): for slice ky, rows
    # [kx*Cp + cin] hold tap (ky, kx) with kx = 0/1/2 = left/center/right, matching the
    # in-kernel [left | center | right] K-packing.
    w_t = jnp.transpose(weights, (0, 3, 4, 2, 1)).astype(jnp.float32)   # (S, 3, 3, Cin, Cout)
    w_t = jnp.pad(w_t, ((0, 0), (0, 0), (0, 0), (0, cp - c), (0, cp - c)))
    w_pack = w_t.reshape(s_stages, 3, 3 * cp, cp).astype(matmul_dtype)

    g = jnp.pad(gammas.astype(jnp.float32), ((0, 0), (0, cp - c))).reshape(s_stages, 1, cp)
    bt = jnp.pad(betas.astype(jnp.float32), ((0, 0), (0, cp - c))).reshape(s_stages, 1, cp)
    bs = jnp.pad(biases.astype(jnp.float32), ((0, 0), (0, cp - c))).reshape(s_stages, 1, cp)

    count = float(n * h * w)
    a = x
    ssum = ssq = None
    for s in range(s_stages):
        last = s == s_stages - 1
        mode = "none" if not last else ("from_input" if s_stages == 1 else "separate")
        out_dtype = jnp.float32 if last else matmul_dtype
        th = _pick_row_tile(h, w, cp,
                            in_bytes=a.dtype.itemsize,
                            out_bytes=jnp.dtype(out_dtype).itemsize,
                            mat_bytes=mat_bytes,
                            has_sep_residual=(mode == "separate"),
                            budget=budget)

        if s == 0:
            psum, psq = _bn_batch_stats(a, th, vmem_limit=budget)
            ssum, ssq = psum.sum(axis=0), psq.sum(axis=0)               # (1, Cp)

        # TODO(synk): E[x^2]-E[x]^2 can cancel in f32 for large-mean activations; a shifted /
        # Welford-style accumulation would be more robust than the clamp below.
        mean = ssum / count
        var = jnp.maximum(ssq / count - mean * mean, 0.0)               # biased (train-mode BN)
        scale = g[s] * jax.lax.rsqrt(var + _EPS)
        shift = bt[s] - mean * scale

        outs = _stage(a, x if mode == "separate" else None, scale, shift, w_pack[s], bs[s],
                      residual_mode=mode, emit_stats=not last, th=th,
                      mat_dtype=matmul_dtype, out_dtype=out_dtype, vmem_limit=budget)
        if last:
            a = outs[0]
        else:
            a, psum, psq = outs
            ssum, ssq = psum.sum(axis=0), psq.sum(axis=0)               # stats for next stage

    return jnp.transpose(a[..., :c], (0, 3, 1, 2))


# --------------------------------------------------------------------------- #
# Reference + self-test                                                        #
# --------------------------------------------------------------------------- #
def _reference(x_nchw, gammas, betas, weights, biases):
    """Pure-JAX reference mirroring the torch module (train-mode BN)."""
    a = x_nchw
    for s in range(gammas.shape[0]):
        mean = a.mean(axis=(0, 2, 3), keepdims=True)
        var = ((a - mean) ** 2).mean(axis=(0, 2, 3), keepdims=True)
        hh = (a - mean) / jnp.sqrt(var + _EPS)
        hh = hh * gammas[s].reshape(1, -1, 1, 1) + betas[s].reshape(1, -1, 1, 1)
        hh = jnp.maximum(hh, 0.0)
        a = jax.lax.conv_general_dilated(
            hh, weights[s], window_strides=(1, 1), padding="SAME",
            dimension_numbers=("NCHW", "OIHW", "NCHW"))
        a = a + biases[s].reshape(1, -1, 1, 1)
    return a + x_nchw


if __name__ == "__main__":
    N, C, H, W = 2, 4, 16, 16   # small NCHW input consistent with Conv2d(c_in, c_in, 3, 1, 1)
    key = jax.random.PRNGKey(0)

    for S in (1, 2):            # double=False and double=True
        k1, k2, k3, k4, k5 = jax.random.split(jax.random.fold_in(key, S), 5)
        x = jax.random.normal(k1, (N, C, H, W), jnp.float32)
        gammas = 1.0 + 0.1 * jax.random.normal(k2, (S, C), jnp.float32)      # BN weight
        betas = 0.1 * jax.random.normal(k3, (S, C), jnp.float32)             # BN bias
        weights = 0.1 * jax.random.normal(k4, (S, C, C, 3, 3), jnp.float32)  # conv weight (OIHW)
        biases = 0.1 * jax.random.normal(k5, (S, C), jnp.float32)            # conv bias

        ref = _reference(x, gammas, betas, weights, biases)

        out_f32 = simple_preact_block(x, gammas, betas, weights, biases,
                                      matmul_dtype=jnp.float32)
        jax.block_until_ready(out_f32)
        assert out_f32.shape == (N, C, H, W)
        assert jnp.allclose(out_f32, ref, rtol=1e-4, atol=1e-4), f"f32 mismatch (S={S})"

        out_bf16 = simple_preact_block(x, gammas, betas, weights, biases,
                                       matmul_dtype=jnp.bfloat16)
        jax.block_until_ready(out_bf16)
        assert jnp.allclose(out_bf16, ref, rtol=5e-2, atol=5e-2), f"bf16 mismatch (S={S})"

    print("KERNEL_OK")
</pallas_src>

<mosaic_0001>
module attributes {stable_mosaic.version = 11 : i64} {
  func.func @_bn_stats_kernel(%arg0: i32, %arg1: i32, %arg2: memref<1x16x16x128xf32, #tpu.memory_space<vmem>>, %arg3: memref<1x1x128xf32, #tpu.memory_space<vmem>>, %arg4: memref<1x1x128xf32, #tpu.memory_space<vmem>>) attributes {dimension_semantics = [#tpu.dimension_semantics<parallel>, #tpu.dimension_semantics<arbitrary>], iteration_bounds = array<i64: 2, 1>, scalar_prefetch = 0 : i64, scratch_operands = 0 : i64, tpu.core_type = #tpu.core_type<tc>, window_params = [{transform_indices = @transform_0, window_bounds = array<i64: 1, 16, 16, 128>}, {transform_indices = @transform_1, window_bounds = array<i64: 1, 1, 128>}, {transform_indices = @transform_2, window_bounds = array<i64: 1, 1, 128>}]} {
    %c0_i32 = arith.constant 0 : i32
    %0 = arith.cmpi eq, %arg1, %c0_i32 : i32
    %1 = arith.extui %0 : i1 to i32
    %c0_i32_0 = arith.constant 0 : i32
    %2 = arith.cmpi ne, %1, %c0_i32_0 : i32
    scf.if %2 {
      %cst_17 = arith.constant 0.000000e+00 : f32
      %23 = vector.broadcast %cst_17 : f32 to vector<1x128xf32>
      %c0_18 = arith.constant 0 : index
      %c0_19 = arith.constant 0 : index
      %c0_20 = arith.constant 0 : index
      %24 = vector.load %arg3[%c0_18, %c0_19, %c0_20] : memref<1x1x128xf32, #tpu.memory_space<vmem>>, vector<1x1x128xf32>
      %25 = vector.shape_cast %24 : vector<1x1x128xf32> to vector<1x128xf32>
      %26 = vector.shape_cast %23 : vector<1x128xf32> to vector<1x1x128xf32>
      tpu.vector_store %arg3[%c0_18, %c0_19, %c0_20], %26 {strides = array<i32>} : memref<1x1x128xf32, #tpu.memory_space<vmem>>, vector<1x1x128xf32>,
      %cst_21 = arith.constant 0.000000e+00 : f32
      %27 = vector.broadcast %cst_21 : f32 to vector<1x128xf32>
      %c0_22 = arith.constant 0 : index
      %c0_23 = arith.constant 0 : index
      %c0_24 = arith.constant 0 : index
      %28 = vector.load %arg4[%c0_22, %c0_23, %c0_24] : memref<1x1x128xf32, #tpu.memory_space<vmem>>, vector<1x1x128xf32>
      %29 = vector.shape_cast %28 : vector<1x1x128xf32> to vector<1x128xf32>
      %30 = vector.shape_cast %27 : vector<1x128xf32> to vector<1x1x128xf32>
      tpu.vector_store %arg4[%c0_22, %c0_23, %c0_24], %30 {strides = array<i32>} : memref<1x1x128xf32, #tpu.memory_space<vmem>>, vector<1x1x128xf32>,
    } else {
    }
    %c0 = arith.constant 0 : index
    %c0_1 = arith.constant 0 : index
    %c0_2 = arith.constant 0 : index
    %c0_3 = arith.constant 0 : index
    %3 = vector.load %arg2[%c0, %c0_1, %c0_2, %c0_3] : memref<1x16x16x128xf32, #tpu.memory_space<vmem>>, vector<1x16x16x128xf32>
    %4 = vector.shape_cast %3 : vector<1x16x16x128xf32> to vector<16x16x128xf32>
    %5 = vector.shape_cast %4 : vector<16x16x128xf32> to vector<256x128xf32>
    %c0_4 = arith.constant 0 : index
    %c0_5 = arith.constant 0 : index
    %c0_6 = arith.constant 0 : index
    %6 = vector.load %arg3[%c0_4, %c0_5, %c0_6] : memref<1x1x128xf32, #tpu.memory_space<vmem>>, vector<1x1x128xf32>
    %7 = vector.shape_cast %6 : vector<1x1x128xf32> to vector<1x128xf32>
    %cst = arith.constant dense<0.000000e+00> : vector<128xf32>
    %8 = vector.multi_reduction <add>, %5, %cst [0] : vector<256x128xf32> to vector<128xf32>
    %9 = vector.shape_cast %8 : vector<128xf32> to vector<1x128xf32>
    %10 = arith.addf %7, %9 : vector<1x128xf32>
    %c0_7 = arith.constant 0 : index
    %c0_8 = arith.constant 0 : index
    %c0_9 = arith.constant 0 : index
    %11 = vector.load %arg3[%c0_7, %c0_8, %c0_9] : memref<1x1x128xf32, #tpu.memory_space<vmem>>, vector<1x1x128xf32>
    %12 = vector.shape_cast %11 : vector<1x1x128xf32> to vector<1x128xf32>
    %13 = vector.shape_cast %10 : vector<1x128xf32> to vector<1x1x128xf32>
    tpu.vector_store %arg3[%c0_7, %c0_8, %c0_9], %13 {strides = array<i32>} : memref<1x1x128xf32, #tpu.memory_space<vmem>>, vector<1x1x128xf32>,
    %c0_10 = arith.constant 0 : index
    %c0_11 = arith.constant 0 : index
    %c0_12 = arith.constant 0 : index
    %14 = vector.load %arg4[%c0_10, %c0_11, %c0_12] : memref<1x1x128xf32, #tpu.memory_space<vmem>>, vector<1x1x128xf32>
    %15 = vector.shape_cast %14 : vector<1x1x128xf32> to vector<1x128xf32>
    %16 = arith.mulf %5, %5 : vector<256x128xf32>
    %cst_13 = arith.constant dense<0.000000e+00> : vector<128xf32>
    %17 = vector.multi_reduction <add>, %16, %cst_13 [0] : vector<256x128xf32> to vector<128xf32>
    %18 = vector.shape_cast %17 : vector<128xf32> to vector<1x128xf32>
    %19 = arith.addf %15, %18 : vector<1x128xf32>
    %c0_14 = arith.constant 0 : index
    %c0_15 = arith.constant 0 : index
    %c0_16 = arith.constant 0 : index
    %20 = vector.load %arg4[%c0_14, %c0_15, %c0_16] : memref<1x1x128xf32, #tpu.memory_space<vmem>>, vector<1x1x128xf32>
    %21 = vector.shape_cast %20 : vector<1x1x128xf32> to vector<1x128xf32>
    %22 = vector.shape_cast %19 : vector<1x128xf32> to vector<1x1x128xf32>
    tpu.vector_store %arg4[%c0_14, %c0_15, %c0_16], %22 {strides = array<i32>} : memref<1x1x128xf32, #tpu.memory_space<vmem>>, vector<1x1x128xf32>,
    return
  }
  func.func @transform_0(%arg0: i32, %arg1: i32) -> (i32, i32, i32, i32) {
    %c0_i32 = arith.constant 0 : i32
    %c0_i32_0 = arith.constant 0 : i32
    %c0_i32_1 = arith.constant 0 : i32
    return %arg0, %arg1, %c0_i32, %c0_i32_0 : i32, i32, i32, i32
  }
  func.func @transform_1(%arg0: i32, %arg1: i32) -> (i32, i32, i32) {
    %c0_i32 = arith.constant 0 : i32
    %c0_i32_0 = arith.constant 0 : i32
    %c0_i32_1 = arith.constant 0 : i32
    return %arg0, %c0_i32, %c0_i32_0 : i32, i32, i32
  }
  func.func @transform_2(%arg0: i32, %arg1: i32) -> (i32, i32, i32) {
    %c0_i32 = arith.constant 0 : i32
    %c0_i32_0 = arith.constant 0 : i32
    %c0_i32_1 = arith.constant 0 : i32
    return %arg0, %c0_i32, %c0_i32_0 : i32, i32, i32
  }
}

</mosaic_0001>

<bundles_post_ra>
// kernel: tpu_custom_call.1
= control target key start
LH: loop header
LB: loop body
LE: loop exit
PB: predicated region body
PF: predicated region fallthrough
CT: control target
= control target key end

     0   :  { %8 = vsyncpa [#allocation3], 0  ;;  %s975_s0 = inlined_call_operand.hbm [shape: f32[2,16,16,128], index: 0, kind: input, shape index: {}]   ;;  %s976_s1 = inlined_call_operand.hbm [shape: f32[2,1,128], index: 1, kind: output, shape index: {0}]   ;;  %s977_s2 = inlined_call_operand.hbm [shape: f32[2,1,128], index: 2, kind: output, shape index: {1}]  }
   0x1   :  { %10 = vsyncpa [#allocation3 + $0x1], 0 }
   0x2   :  { %11 = vsyncpa [#allocation4], 0 }
   0x3   :  { %13 = vsyncpa [#allocation4 + $0x1], 0 }
   0x4   :  { %14 = vsyncpa [#allocation7], 0 }
   0x5   :  { %16 = vsyncpa [#allocation7 + $0x1], 0  ;;  %s725_s9 = smov 0   ;;  %s727_s10 = smov 0  }
   0x6   :  { %s729_s11 = smov 0   ;;  %s731_s12 = smov 0  }
   0x7   :  { %s733_s13 = smov 0   ;;  %s735_s14 = smov 0  }
   0x8 LB: > { %s474_s15 = sadd.s32 4294967295, %s702_s14   ;;  %s475_s16 = sadd.s32 4294967294, %s702_s14   ;;  %s702_s14 = sphi %s735_s14, %s22_s14   ;;  %s698_s13 = sphi %s733_s13, %s992_s13   ;;  %s694_s12 = sphi %s731_s12, %s991_s12   ;;  %s690_s11 = sphi %s729_s11, %s990_s11   ;;  %s686_s10 = sphi %s727_s10, %s989_s10   ;;  %s682_s9 = sphi %s725_s9, %s988_s9  }
   0x9   : > { %s34_s17 = sadd.s32 1, %s698_s13  ;;  %s43_s18 = sadd.s32 1, %s690_s11 }
   0xa   : > { %p36_p0 = scmp.ge.s32.totalorder %s34_s17, 2  ;;  %p50_p1 = scmp.ne.s32.totalorder %s690_s11, %s686_s10 }
   0xb   : > { %p51_p2 = scmp.eq.s32.totalorder %s702_s14, 0  ;;  %p56_p3 = scmp.ne.s32.totalorder %s686_s10, %s682_s9 }
   0xc   : > { %s994_s17 = smov (%p36_p0, %s34_s17), 0  ;;  %p57_p5 = scmp.eq.s32.totalorder %s474_s15, 0 }
   0xd   : > { %p766_p4 = por %p51_p2, %p50_p1  ;;  %s38_s20 = ssub.s32 %s698_s13, %s994_s17 }
   0xe   : > { %p80_p6 = scmp.eq.s32.totalorder %s474_s15, 1  ;;  %p41_p7 = scmp.eq.s32.totalorder %s38_s20, 0 }
   0xf   : > { %p772_p8 = por %p57_p5, %p56_p3  ;;  %p86_p10 = scmp.eq.s32.totalorder %s475_s16, 1 }
  0x10   : > { %p776_p9 = por %p80_p6, %p50_p1  ;;  %p505_p13 = scmp.lt.s32.totalorder %s702_s14, 2 }
  0x11   : > { %s781_s23 = scalar_select %p41_p7, %s690_s11, %s43_s18  }
  0x12   : > { %s981_s22 = scalar_select %p776_p9, 1, 0 }
  0x13   : > { %p783_p11 = por %p86_p10, %p56_p3  ;;  %s132_s25 = sand.u32 1, %s690_s11  }
  0x14   : > { %s478_s26 = sshll.u32 %s132_s25, 8  ;;  %s487_s27 = sshll.u32 %s698_s13, 12 }
  0x15   : > { %s982_s24 = scalar_select %p783_p11, 1, 0 }
  0x16   : > { %s794_s30 = scalar_lea.hbm %s975_s0, %s487_s27  ;;  %s136_s3 = scalar_lea.vmem [#allocation2], %s478_s26 }
  0x17   : > { %s146_s4 = sshll.u32 %s136_s3, 4  ;;  %p800_p0 = pnand %p505_p13, %p766_p4  ;;  %s796_s4 = int_to_ptr.vmem [resolvable:$true] %s146_s4 }
  0x18   : > { %s805_s6 = scalar_lea.sflag [#allocation3], %s132_s25  ;;  %s558_s7 = scalar_lea.hbm %s794_s30, 4096 }
  0x19   : > { %p559_p2 = scmp.ne.s32.totalorder %s794_s30, %s558_s7  ;;  %p560_p3 = pneg %p800_p0 }
  0x1a   : > { %s563_s16 = scalar_lea.hbm %s975_s0, 8192  ;;  %p564_p4 = scmp.lt.u32.totalorder %s794_s30, %s975_s0 }
  0x1b   : > { %p561_p5 = pnand %p560_p3, %p559_p2  ;;  %p565_p7 = scmp.lt.u32.totalorder %s563_s16, %s558_s7 }
  0x1c   : > { %p567_p13 = scmp.lt.u32.totalorder %s558_s7, %s794_s30 }
  0x1d   : > { %p562_p6 = pneg %p561_p5  ;;  %p566_p10 = por %p565_p7, %p564_p4 }
  0x1f   : > { %p568_p12 = por %p567_p13, %p566_p10 }
  0x21   : > { %p569_p1 = pnand %p568_p12, %p562_p6 }
  0x23   : > { %572 = shalt.err (!%p569_p1)
}
  0x24   : > { %s573_s20 = scalar_lea.vmem %s796_s4, 4096  ;;  %s704_s25 = smov [#allocation2]  }
  0x25   : > { %p574_p2 = scmp.ne.s32.totalorder %s796_s4, %s573_s20  ;;  %s578_s26 = sshll.u32 %s704_s25, 4  ;;  %s579_s26 = int_to_ptr.vmem [resolvable:$false] %s578_s26 }
  0x26   : > { %s580_s27 = scalar_lea.vmem %s579_s26, 8192  ;;  %p581_p9 = scmp.lt.s32.totalorder %s796_s4, %s579_s26 }
  0x27   : > { %p576_p5 = pnand %p574_p2, %p560_p3  ;;  %p582_p4 = scmp.lt.s32.totalorder %s580_s27, %s573_s20 }
  0x29   : > { %p577_p11 = pneg %p576_p5  ;;  %p583_p7 = por %p582_p4, %p581_p9 }
  0x2b   : > { %p584_p10 = pnand %p583_p7, %p577_p11 }
  0x2d   : > { %587 = shalt.err (!%p584_p10)
}
  0x2e   : > { %s705_s28 = smov 128   ;;  %s706_s29 = smov 8  }
  0x2f   : > { %497 = dma.hbm_to_vmem [thread:$0]  (!%p800_p0), %s794_s30, 4096, %s796_s4, %s805_s6, %s705_s28, %s705_s28, %s706_s29  }
  0x30   : > { %p154_p12 = scmp.lt.s32.totalorder %s702_s14, 3  ;;  %p984_p1 = scmp.ge.s32.totalorder %s702_s14, 1 }
  0x32   : > { %p155_p3 = pnand %p984_p1, %p154_p12 }
  0x33   : > { %s837_s3 = sand.u32 (!%p155_p3), 1, %s686_s10  }
  0x34   : > { %158 = sbr.rel (%p155_p3) target bundleno = 174 (0xae), region = 24  ;;  %s482_s7 = sshll.u32 (!%p155_p3), %s837_s3, 8 }
  0x35   : > { %s161_s8 = scalar_lea.sflag (!%p155_p3), [#allocation3], %s837_s3  ;;  %s841_s15 = scalar_lea.vmem (!%p155_p3), [#allocation2], %s482_s7 }
  0x3b   : > { %669 = dma.done.wait (%p772_p8), %s161_s8, 4096  }
  0x3c   : > { %671 = vsyncadd (%p772_p8), %s161_s8, 4294963200  ;;  %s848_s30 = scalar_lea.vmem [#allocation5], %s837_s3  ;;  %v707_v0 = vmov 0.0   ;;  %s852_s4 = scalar_lea.vmem [#allocation6], %s837_s3  ;;  %v195_v1 = vld [vmem:[%s841_s15] sm:$0xff]  ;;  %v196_v2 = vld [vmem:[%s841_s15 + $0x8] sm:$0xff] }
  0x3d   : > { %193 = vst [vmem:[%s848_s30] sm:$0x1] %v707_v0  ;;  %194 = vst [vmem:[%s852_s4] sm:$0x1] %v707_v0  ;;  %v197_v3 = vld [vmem:[%s841_s15 + $0x10] sm:$0xff]  ;;  %v198_v4 = vld [vmem:[%s841_s15 + $0x18] sm:$0xff]  ;;  %v228_v5 = vadd.f32 %v196_v2, %v195_v1  ;;  %v268_v6 = vmul.f32 %v195_v1, %v195_v1  ;;  %v269_v7 = vmul.f32 %v196_v2, %v196_v2  ;;  %s483_s21 = sshll.u32 %s694_s12, 4  ;;  %s356_s5 = sshll.u32 %s848_s30, 4  ;;  %s897_s5 = int_to_ptr.vmem [resolvable:$true] %s356_s5 }
  0x3e   : > { %v270_v8 = vmul.f32 %v197_v3, %v197_v3  ;;  %v199_v9 = vld [vmem:[%s841_s15 + $0x20] sm:$0xff]  ;;  %v271_v11 = vmul.f32 %v198_v4, %v198_v4  ;;  %v200_v13 = vld [vmem:[%s841_s15 + $0x28] sm:$0xff]  ;;  %v201_v17 = vld [vmem:[%s841_s15 + $0x30] sm:$0xff]  ;;  %s369_s6 = sshll.u32 %s852_s4, 4  ;;  %s895_s19 = scalar_lea.hbm %s976_s1, %s483_s21  ;;  %s905_s6 = int_to_ptr.vmem [resolvable:$true] %s369_s6 }
  0x3f   : > { %v229_v10 = vadd.f32 %v228_v5, %v197_v3  ;;  %v300_v12 = vadd.f32 %v269_v7, %v268_v6  ;;  %v272_v15 = vmul.f32 %v199_v9, %v199_v9  ;;  %v273_v19 = vmul.f32 %v200_v13, %v200_v13  ;;  %v202_v21 = vld [vmem:[%s841_s15 + $0x38] sm:$0xff]  ;;  %v203_v25 = vld [vmem:[%s841_s15 + $0x40] sm:$0xff]  ;;  %v204_v29 = vld [vmem:[%s841_s15 + $0x48] sm:$0xff]  ;;  %s903_s25 = scalar_lea.hbm %s977_s2, %s483_s21  ;;  %s340_s26 = scalar_lea.sflag [#allocation4], %s837_s3 }
  0x40   : > { %v274_v23 = vmul.f32 %v201_v17, %v201_v17  ;;  %v275_v27 = vmul.f32 %v202_v21, %v202_v21  ;;  %v276_v31 = vmul.f32 %v203_v25, %v203_v25  ;;  %v205_v33 = vld [vmem:[%s841_s15 + $0x50] sm:$0xff]  ;;  %v277_v35 = vmul.f32 %v204_v29, %v204_v29  ;;  %v206_v37 = vld [vmem:[%s841_s15 + $0x58] sm:$0xff]  ;;  %v207_v41 = vld [vmem:[%s841_s15 + $0x60] sm:$0xff]  ;;  %s588_s27 = scalar_lea.vmem %s897_s5, 16  ;;  %p985_p9 = scmp.ne.s32.totalorder %s981_s22, 0 }
  0x41   : > { %v230_v14 = vadd.f32 %v229_v10, %v198_v4  ;;  %v301_v16 = vadd.f32 %v300_v12, %v270_v8  ;;  %v278_v39 = vmul.f32 %v205_v33, %v205_v33  ;;  %v279_v43 = vmul.f32 %v206_v37, %v206_v37  ;;  %v208_v45 = vld [vmem:[%s841_s15 + $0x68] sm:$0xff]  ;;  %v209_v49 = vld [vmem:[%s841_s15 + $0x70] sm:$0xff]  ;;  %v210_v53 = vld [vmem:[%s841_s15 + $0x78] sm:$0xff]  ;;  %p589_p8 = scmp.ne.s32.totalorder %s897_s5, %s588_s27  ;;  %s708_s28 = smov [#allocation5]  }
  0x42   : > { %v280_v47 = vmul.f32 %v207_v41, %v207_v41  ;;  %v281_v51 = vmul.f32 %v208_v45, %v208_v45  ;;  %v282_v55 = vmul.f32 %v209_v49, %v209_v49  ;;  %v211_v57 = vld [vmem:[%s841_s15 + $0x80] sm:$0xff]  ;;  %v283_v59 = vmul.f32 %v210_v53, %v210_v53  ;;  %v212_v61 = vld [vmem:[%s841_s15 + $0x88] sm:$0xff]  ;;  %v213_v1 = vld [vmem:[%s841_s15 + $0x90] sm:$0xff]  ;;  %s592_s29 = sshll.u32 %s708_s28, 4  ;;  %s593_s29 = int_to_ptr.vmem [resolvable:$false] %s592_s29 }
  0x43   : > { %v231_v18 = vadd.f32 %v230_v14, %v199_v9  ;;  %v302_v20 = vadd.f32 %v301_v16, %v271_v11  ;;  %v284_v63 = vmul.f32 %v211_v57, %v211_v57  ;;  %v285_v3 = vmul.f32 %v212_v61, %v212_v61  ;;  %v214_v5 = vld [vmem:[%s841_s15 + $0x98] sm:$0xff]  ;;  %v215_v9 = vld [vmem:[%s841_s15 + $0xa0] sm:$0xff]  ;;  %p590_p11 = pnand %p589_p8, %p985_p9  ;;  %s594_s7 = scalar_lea.vmem %s593_s29, 32 }
  0x44   : > { %v286_v7 = vmul.f32 %v213_v1, %v213_v1  ;;  %v287_v11 = vmul.f32 %v214_v5, %v214_v5  ;;  %p595_p6 = scmp.lt.s32.totalorder %s897_s5, %s593_s29  ;;  %p596_p13 = scmp.lt.s32.totalorder %s594_s7, %s588_s27 }
  0x45   : > { %v232_v22 = vadd.f32 %v231_v18, %v200_v13  ;;  %v303_v24 = vadd.f32 %v302_v20, %v272_v15  ;;  %v216_v13 = vld [vmem:[%s841_s15 + $0xa8] sm:$0xff]  ;;  %v288_v15 = vmul.f32 %v215_v9, %v215_v9  ;;  %p591_p0 = pneg %p590_p11 }
  0x46   : > { %p597_p2 = por %p596_p13, %p595_p6 }
  0x47   : > { %v233_v26 = vadd.f32 %v232_v22, %v201_v17  ;;  %v304_v28 = vadd.f32 %v303_v24, %v273_v19  ;;  %v217_v17 = vld [vmem:[%s841_s15 + $0xb0] sm:$0xff]  ;;  %v289_v19 = vmul.f32 %v216_v13, %v216_v13 }
  0x48   : > { %p598_p5 = pnand %p597_p2, %p591_p0 }
  0x49   : > { %v234_v30 = vadd.f32 %v233_v26, %v202_v21  ;;  %v305_v32 = vadd.f32 %v304_v28, %v274_v23  ;;  %v218_v21 = vld [vmem:[%s841_s15 + $0xb8] sm:$0xff]  ;;  %v290_v23 = vmul.f32 %v217_v17, %v217_v17 }
  0x4b   : > { %v235_v34 = vadd.f32 %v234_v30, %v203_v25  ;;  %v306_v36 = vadd.f32 %v305_v32, %v275_v27  ;;  %v219_v25 = vld [vmem:[%s841_s15 + $0xc0] sm:$0xff]  ;;  %v291_v27 = vmul.f32 %v218_v21, %v218_v21 }
  0x4d   : > { %v236_v38 = vadd.f32 %v235_v34, %v204_v29  ;;  %v307_v40 = vadd.f32 %v306_v36, %v276_v31  ;;  %v220_v29 = vld [vmem:[%s841_s15 + $0xc8] sm:$0xff]  ;;  %v292_v31 = vmul.f32 %v219_v25, %v219_v25 }
  0x4f   : > { %v237_v42 = vadd.f32 %v236_v38, %v205_v33  ;;  %v308_v44 = vadd.f32 %v307_v40, %v277_v35  ;;  %v221_v33 = vld [vmem:[%s841_s15 + $0xd0] sm:$0xff]  ;;  %v293_v35 = vmul.f32 %v220_v29, %v220_v29 }
  0x51   : > { %v238_v46 = vadd.f32 %v237_v42, %v206_v37  ;;  %v309_v48 = vadd.f32 %v308_v44, %v278_v39  ;;  %v222_v37 = vld [vmem:[%s841_s15 + $0xd8] sm:$0xff]  ;;  %v294_v39 = vmul.f32 %v221_v33, %v221_v33 }
  0x53   : > { %v239_v50 = vadd.f32 %v238_v46, %v207_v41  ;;  %v310_v52 = vadd.f32 %v309_v48, %v279_v43  ;;  %v223_v41 = vld [vmem:[%s841_s15 + $0xe0] sm:$0xff]  ;;  %v295_v43 = vmul.f32 %v222_v37, %v222_v37 }
  0x55   : > { %v240_v54 = vadd.f32 %v239_v50, %v208_v45  ;;  %v311_v56 = vadd.f32 %v310_v52, %v280_v47  ;;  %v224_v45 = vld [vmem:[%s841_s15 + $0xe8] sm:$0xff]  ;;  %v296_v47 = vmul.f32 %v223_v41, %v223_v41 }
  0x57   : > { %v241_v58 = vadd.f32 %v240_v54, %v209_v49  ;;  %v312_v60 = vadd.f32 %v311_v56, %v281_v51  ;;  %v225_v49 = vld [vmem:[%s841_s15 + $0xf0] sm:$0xff]  ;;  %v297_v51 = vmul.f32 %v224_v45, %v224_v45 }
  0x59   : > { %v242_v62 = vadd.f32 %v241_v58, %v210_v53  ;;  %v313_v0 = vadd.f32 %v312_v60, %v282_v55  ;;  %v226_v53 = vld [vmem:[%s841_s15 + $0xf8] sm:$0xff]  ;;  %v298_v55 = vmul.f32 %v225_v49, %v225_v49 }
  0x5a   : > { %v299_v58 = vmul.f32 %v226_v53, %v226_v53 }
  0x5b   : > { %v243_v2 = vadd.f32 %v242_v62, %v211_v57  ;;  %v314_v4 = vadd.f32 %v313_v0, %v283_v59 }
  0x5d   : > { %v244_v6 = vadd.f32 %v243_v2, %v212_v61  ;;  %v315_v8 = vadd.f32 %v314_v4, %v284_v63 }
  0x5f   : > { %v245_v10 = vadd.f32 %v244_v6, %v213_v1  ;;  %v316_v12 = vadd.f32 %v315_v8, %v285_v3 }
  0x61   : > { %v246_v14 = vadd.f32 %v245_v10, %v214_v5  ;;  %v317_v16 = vadd.f32 %v316_v12, %v286_v7  ;;  %v227_v7 = vld [vmem:[%s848_s30] sm:$0x1] }
  0x62   : > { %v267_v12 = vld [vmem:[%s852_s4] sm:$0x1] }
  0x63   : > { %v247_v18 = vadd.f32 %v246_v14, %v215_v9  ;;  %v318_v20 = vadd.f32 %v317_v16, %v287_v11 }
  0x65   : > { %v248_v22 = vadd.f32 %v247_v18, %v216_v13  ;;  %v319_v24 = vadd.f32 %v318_v20, %v288_v15 }
  0x67   : > { %v249_v26 = vadd.f32 %v248_v22, %v217_v17  ;;  %v320_v28 = vadd.f32 %v319_v24, %v289_v19 }
  0x69   : > { %v250_v30 = vadd.f32 %v249_v26, %v218_v21  ;;  %v321_v32 = vadd.f32 %v320_v28, %v290_v23 }
  0x6b   : > { %v251_v34 = vadd.f32 %v250_v30, %v219_v25  ;;  %v322_v36 = vadd.f32 %v321_v32, %v291_v27 }
  0x6d   : > { %v252_v38 = vadd.f32 %v251_v34, %v220_v29  ;;  %v323_v40 = vadd.f32 %v322_v36, %v292_v31 }
  0x6f   : > { %v253_v42 = vadd.f32 %v252_v38, %v221_v33  ;;  %v324_v44 = vadd.f32 %v323_v40, %v293_v35 }
  0x71   : > { %v254_v46 = vadd.f32 %v253_v42, %v222_v37  ;;  %v325_v48 = vadd.f32 %v324_v44, %v294_v39 }
  0x73   : > { %v255_v50 = vadd.f32 %v254_v46, %v223_v41  ;;  %v326_v52 = vadd.f32 %v325_v48, %v295_v43 }
  0x75   : > { %v256_v54 = vadd.f32 %v255_v50, %v224_v45  ;;  %v327_v56 = vadd.f32 %v326_v52, %v296_v47 }
  0x77   : > { %v257_v57 = vadd.f32 %v256_v54, %v225_v49  ;;  %v328_v59 = vadd.f32 %v327_v56, %v297_v51 }
  0x79   : > { %v258_v60 = vadd.f32 %v257_v57, %v226_v53  ;;  %v329_v61 = vadd.f32 %v328_v59, %v298_v55 }
  0x7b   : > { %v259_v62 = vrot.slane %v258_v60, 4  ;;  %v330_v63 = vadd.f32 %v329_v61, %v299_v58 }
  0x7d   : > { %v260_v0 = vadd.f32 %v259_v62, %v258_v60  ;;  %v331_v1 = vrot.slane %v330_v63, 4 }
  0x7f   : > { %v261_v2 = vrot.slane %v260_v0, 2  ;;  %v332_v3 = vadd.f32 %v331_v1, %v330_v63 }
  0x81   : > { %v262_v4 = vadd.f32 %v261_v2, %v260_v0  ;;  %v333_v5 = vrot.slane %v332_v3, 2 }
  0x83   : > { %v263_v6 = vrot.slane %v262_v4, 1  ;;  %v334_v8 = vadd.f32 %v333_v5, %v332_v3 }
  0x85   : > { %v264_v9 = vadd.f32 %v263_v6, %v262_v4  ;;  %v335_v10 = vrot.slane %v334_v8, 1 }
  0x87   : > { %v265_v11 = vadd.f32 %v264_v9, %v227_v7  ;;  %v336_v13 = vadd.f32 %v335_v10, %v334_v8 }
  0x89   : > { %266 = vst [vmem:[%s848_s30] sm:$0x1] %v265_v11  ;;  %v337_v14 = vadd.f32 %v336_v13, %v267_v12 }
  0x8a   : > { %601 = shalt.err (!%p598_p5)
}
  0x8b   : > { %s602_s8 = scalar_lea.hbm %s895_s19, 16  ;;  %s606_s21 = scalar_lea.hbm %s976_s1, 32 }
  0x8c   : > { %p603_p4 = scmp.ne.s32.totalorder %s895_s19, %s602_s8  ;;  %p607_p12 = scmp.lt.u32.totalorder %s895_s19, %s976_s1 }
  0x8d   : > { %p608_p1 = scmp.lt.u32.totalorder %s606_s21, %s602_s8  ;;  %p610_p8 = scmp.lt.u32.totalorder %s602_s8, %s895_s19 }
  0x8e   : > { %p604_p7 = pnand %p603_p4, %p985_p9 }
  0x8f   : > { %p609_p3 = por %p608_p1, %p607_p12 }
  0x90   : > { %p605_p10 = pneg %p604_p7 }
  0x91   : > { %p611_p11 = por %p610_p8, %p609_p3 }
  0x93   : > { %p612_p0 = pnand %p611_p11, %p605_p10 }
  0x95   : > { %615 = shalt.err (!%p612_p0)
}
  0x96   : > { %490 = dma.vmem_to_hbm [thread:$0]  (%p985_p9), %s897_s5, 16, %s895_s19, %s340_s26   ;;  %338 = vst [vmem:[%s852_s4] sm:$0x1] %v337_v14 }
  0x97   : > { %s344_s12 = scalar_lea.sflag [#allocation7], %s837_s3  ;;  %s616_s20 = scalar_lea.vmem %s905_s6, 16 }
  0x98   : > { %p617_p6 = scmp.ne.s32.totalorder %s905_s6, %s616_s20  ;;  %s709_s27 = smov [#allocation6]  }
  0x99   : > { %s620_s28 = sshll.u32 %s709_s27, 4  ;;  %s621_s28 = int_to_ptr.vmem [resolvable:$false] %s620_s28 }
  0x9a   : > { %p618_p13 = pnand %p617_p6, %p985_p9  ;;  %s622_s29 = scalar_lea.vmem %s621_s28, 32 }
  0x9b   : > { %p623_p5 = scmp.lt.s32.totalorder %s905_s6, %s621_s28  ;;  %p624_p4 = scmp.lt.s32.totalorder %s622_s29, %s616_s20 }
  0x9c   : > { %p619_p2 = pneg %p618_p13 }
  0x9d   : > { %p625_p7 = por %p624_p4, %p623_p5 }
  0x9f   : > { %p626_p10 = pnand %p625_p7, %p619_p2 }
  0xa1   : > { %629 = shalt.err (!%p626_p10)
}
  0xa2   : > { %s630_s3 = scalar_lea.hbm %s903_s25, 16  ;;  %s634_s19 = scalar_lea.hbm %s977_s2, 32 }
  0xa3   : > { %p631_p12 = scmp.ne.s32.totalorder %s903_s25, %s630_s3  ;;  %p635_p8 = scmp.lt.u32.totalorder %s903_s25, %s977_s2 }
  0xa4   : > { %p636_p11 = scmp.lt.u32.totalorder %s634_s19, %s630_s3  ;;  %p638_p6 = scmp.lt.u32.totalorder %s630_s3, %s903_s25 }
  0xa5   : > { %p632_p1 = pnand %p631_p12, %p985_p9 }
  0xa6   : > { %p637_p0 = por %p636_p11, %p635_p8 }
  0xa7   : > { %p633_p3 = pneg %p632_p1 }
  0xa8   : > { %p639_p13 = por %p638_p6, %p637_p0 }
  0xaa   : > { %p640_p2 = pnand %p639_p13, %p633_p3 }
  0xac   : > { %643 = shalt.err (!%p640_p2)
}
  0xad   : > { %491 = dma.vmem_to_hbm [thread:$0]  (%p985_p9), %s905_s6, 16, %s903_s25, %s344_s12  }
  0xae PF: > { %s381_s8 = sand.u32 1, %s682_s9   ;;  %p986_p5 = scmp.ne.s32.totalorder %s982_s24, 0 }
  0xaf   : > { %p987_p4 = scmp.ge.s32.totalorder %s702_s14, 2  ;;  %s382_s15 = scalar_lea.sflag [#allocation4], %s381_s8 }
  0xb1   : > { %p499_p7 = pnand %p987_p4, %p986_p5 }
  0xb3   : > { %673 = dma.done.wait (!%p499_p7), %s382_s15, 16  }
  0xb4   : > { %675 = vsyncadd (!%p499_p7), %s382_s15, 4294967280  ;;  %s390_s30 = scalar_lea.sflag [#allocation7], %s381_s8 }
  0xb5   : > { %677 = dma.done.wait (!%p499_p7), %s390_s30, 16  }
  0xb6   : > { %679 = vsyncadd (!%p499_p7), %s390_s30, 4294967280  ;;  %s22_s14 = sadd.s32 1, %s702_s14   ;;  %s988_s9 = smov %s686_s10 }
  0xb7   : > { %p19_p10 = scmp.ge.s32.totalorder %s22_s14, 4   ;;  %s989_s10 = smov %s690_s11 }
  0xb8   : > { %s990_s11 = smov %s781_s23  ;;  %s991_s12 = smov %s698_s13 }
  0xb9   : > { %s992_s13 = smov %s994_s17  ;;  %21 = sbr.rel (!%p19_p10) target bundleno = 8 (0x8), region = 90 }
  0xc0   :  { %394 = vsyncpa [#allocation3], 1 }
  0xc1   :  { %396 = vsyncpa [#allocation3 + $0x1], 1 }
  0xc2   :  { %397 = vsyncpa [#allocation4], 1 }
  0xc3   :  { %399 = vsyncpa [#allocation4 + $0x1], 1 }
  0xc4   :  { %400 = vsyncpa [#allocation7], 1 }
  0xc5   :  { %402 = vsyncpa [#allocation7 + $0x1], 1 }

</bundles_post_ra>
